<compile_context>
chip_gen: v6e
topology: v6e:2x2x1
jax: 0.10.0
libtpu: 0.0.40
codegen_flags: <defaults>
</compile_context>

<pallas_src>
import jax
import jax.numpy as jnp
from jax.experimental import pallas as pl
from jax.experimental.pallas import tpu as pltpu


# --------------------------------------------------------------------------- kernels
def _linear_kernel(x_ref, w_ref, b_ref, o_ref):
    # MXU matmul (bf16 in, f32 accumulate); f32 bias add on the VPU; one downcast.
    acc = jnp.dot(x_ref[...], w_ref[...], preferred_element_type=jnp.float32)
    o_ref[...] = (acc + b_ref[...]).astype(o_ref.dtype)


def _linear_kernel_ktiled(x_ref, w_ref, b_ref, o_ref, acc_ref):
    # K (dim) reduction tiled: f32 accumulator scratch, init/finalize via pl.when.
    k = pl.program_id(1)

    @pl.when(k == 0)
    def _():
        acc_ref[...] = jnp.zeros_like(acc_ref)

    acc_ref[...] += jnp.dot(x_ref[...], w_ref[...], preferred_element_type=jnp.float32)

    @pl.when(k == pl.num_programs(1) - 1)
    def _():
        o_ref[...] = (acc_ref[...] + b_ref[...]).astype(o_ref.dtype)


# --------------------------------------------------------------------------- helpers
def _round_up(v, m):
    return ((v + m - 1) // m) * m


def _vmem_capacity_bytes():
    try:
        info = pltpu.get_tpu_info()
        cap = getattr(info, "vmem_capacity_bytes", None)
        if cap:
            return int(cap)
    except Exception:
        pass
    return 64 * 1024 * 1024  # conservative: v7x per-TensorCore VMEM


def prepare_classifier_params(weight, bias, lane=128, compute_dtype=jnp.bfloat16):
    """One-time (outside the hot path) layout + precision prep.

    weight: (n_way, dim), bias: (n_way,)
    Returns weight pre-transposed, cast to the bf16 compute dtype and zero-padded to
    (dim, n_pad), and bias kept in f32 padded to (1, n_pad), with n_pad = n_way
    rounded up to a multiple of 128 lanes (lane-dense output slab).
    """
    n_way, dim = weight.shape
    n_pad = max(lane, _round_up(n_way, lane))
    w_p = (jnp.zeros((dim, n_pad), compute_dtype)
           .at[:, :n_way].set(weight.T.astype(compute_dtype)))
    b_p = (jnp.zeros((1, n_pad), jnp.float32)
           .at[:, :n_way].set(bias.reshape(1, n_way).astype(jnp.float32)))
    return w_p, b_p


# --------------------------------------------------------------------------- forward
def classifier_forward(x, w_padded, b_padded, n_way, *, slice_output=True):
    """x: (B, dim), w_padded: (dim, n_pad) bf16, b_padded: (1, n_pad) f32.

    Returns (B, n_way) logits (or the padded (B, n_pad) slab if slice_output=False).
    """
    B, dim = x.shape
    dim_w, n_pad = w_padded.shape
    assert dim_w == dim

    compute_dtype = w_padded.dtype
    out_dtype = x.dtype
    x_c = x.astype(compute_dtype)

    in_item = jnp.dtype(compute_dtype).itemsize
    out_item = jnp.dtype(out_dtype).itemsize
    bias_item = jnp.dtype(b_padded.dtype).itemsize

    vmem_cap = _vmem_capacity_bytes()
    vmem_budget = vmem_cap // 2  # headroom for compiler scratch / spills

    # ---- batch tile: target ~2 MiB of x per grid step (multiple of 8 sublanes) ----
    tm_target = max(256, (2 * 1024 * 1024) // max(1, dim * in_item))

    w_res_bytes = 2 * dim * n_pad * in_item          # resident weight (double-buffered)
    b_res_bytes = 2 * n_pad * bias_item

    def single_k_bytes(tm):
        return (2 * tm * dim * in_item               # x, double-buffered
                + 2 * tm * n_pad * out_item          # out, double-buffered
                + w_res_bytes + b_res_bytes)

    # Use the K-tiled path only when even a minimal tile with a resident weight
    # cannot fit VMEM (very large dim) and dim tiles cleanly into 128 chunks.
    use_k_tiling = (single_k_bytes(8) > vmem_budget) and (dim % 128 == 0)

    if not use_k_tiling:
        tm_cap = tm_target
        while tm_cap > 8 and single_k_bytes(_round_up(tm_cap, 8)) > vmem_budget:
            tm_cap //= 2
        tm_cap = max(8, _round_up(tm_cap, 8))

        TM = B if B <= tm_cap else tm_cap
        # v7x: ensure >= 2 grid steps so both TensorCores get work on the
        # "parallel" batch axis (harmless ~0.35 us extra on 1-TC v5e/v6e).
        if B >= 16 and B <= TM:
            TM = _round_up((B + 1) // 2, 8)

        grid = (pl.cdiv(B, TM),)
        need_bytes = single_k_bytes(TM)

        in_specs = [
            pl.BlockSpec((TM, dim), lambda i: (i, 0)),      # x: tiled over batch
            pl.BlockSpec((dim, n_pad), lambda i: (0, 0)),   # W^T: resident
            pl.BlockSpec((1, n_pad), lambda i: (0, 0)),     # bias: resident
        ]
        out_spec = pl.BlockSpec((TM, n_pad), lambda i: (i, 0))
        scratch = []
        kernel = _linear_kernel
        semantics = ("parallel",)
    else:
        # ---- K-tiled path for very large dim: keeps VMEM flat, restores large TM ----
        TK = 128
        for cand in (16384, 8192, 4096, 2048, 1024, 512, 256, 128):
            if dim % cand == 0 and 2 * cand * n_pad * in_item <= vmem_budget // 4:
                TK = cand
                break

        def k_tiled_bytes(tm, tk):
            return (2 * tm * tk * in_item            # x slab, double-buffered
                    + 2 * tk * n_pad * in_item       # weight slab, double-buffered
                    + tm * n_pad * 4                 # f32 accumulator scratch
                    + 2 * tm * n_pad * out_item      # out, double-buffered
                    + b_res_bytes)

        tm_cap = tm_target
        while tm_cap > 8 and k_tiled_bytes(_round_up(tm_cap, 8), TK) > vmem_budget:
            tm_cap //= 2
        tm_cap = max(8, _round_up(tm_cap, 8))

        TM = B if B <= tm_cap else tm_cap
        if B >= 16 and B <= TM:
            TM = _round_up((B + 1) // 2, 8)

        grid = (pl.cdiv(B, TM), dim // TK)           # reduction axis last
        need_bytes = k_tiled_bytes(TM, TK)

        in_specs = [
            pl.BlockSpec((TM, TK), lambda i, k: (i, k)),
            pl.BlockSpec((TK, n_pad), lambda i, k: (k, 0)),
            pl.BlockSpec((1, n_pad), lambda i, k: (0, 0)),
        ]
        out_spec = pl.BlockSpec((TM, n_pad), lambda i, k: (i, 0))
        scratch = [pltpu.VMEM((TM, n_pad), jnp.float32)]
        kernel = _linear_kernel_ktiled
        semantics = ("parallel", "arbitrary")

    # Honest scheduler hint with per-array itemsizes (bf16 inputs, f32 bias/output).
    cost = pl.CostEstimate(
        flops=2 * B * dim * n_pad,
        transcendentals=0,
        bytes_accessed=int(x_c.size * in_item
                           + w_padded.size * in_item
                           + b_padded.size * bias_item
                           + B * n_pad * out_item),
    )

    # Raise the scoped-VMEM limit only when the working set needs it (default scoped
    # limit is 16 MiB on v5e, 32 MiB on v6e/v7x); never exceed ~90% of physical VMEM.
    vmem_limit = None
    if need_bytes > 12 * 1024 * 1024:
        vmem_limit = int(min(0.9 * vmem_cap, need_bytes + need_bytes // 2))

    out_padded = pl.pallas_call(
        kernel,
        out_shape=jax.ShapeDtypeStruct((B, n_pad), out_dtype),
        grid_spec=pltpu.PrefetchScalarGridSpec(
            num_scalar_prefetch=0,
            grid=grid,
            in_specs=in_specs,
            out_specs=out_spec,
            scratch_shapes=scratch,
        ),
        compiler_params=pltpu.CompilerParams(
            dimension_semantics=semantics,
            vmem_limit_bytes=vmem_limit,
        ),
        cost_estimate=cost,
    )(x_c, w_padded, b_padded)

    if slice_output:
        # TODO(synk): fuse this slice (or mask lanes >= n_way) into the downstream
        # consumer to avoid an extra HBM round-trip on the padded slab.
        return out_padded[:, :n_way]
    return out_padded


# --------------------------------------------------------------------------- demo
if __name__ == "__main__":
    # Small shapes consistent with the module: dim=32 features, n_way=5 classes.
    batch, dim, n_way = 8, 32, 5

    key = jax.random.PRNGKey(0)
    kx, kw, kb = jax.random.split(key, 3)

    # Deterministic init (matches nn.Linear's uniform(-1/sqrt(dim), 1/sqrt(dim))).
    bound = 1.0 / (dim ** 0.5)
    weight = jax.random.uniform(kw, (n_way, dim), jnp.float32, -bound, bound)
    bias = jax.random.uniform(kb, (n_way,), jnp.float32, -bound, bound)

    x = jax.random.normal(kx, (batch, dim), jnp.float32)

    # One-time layout/precision prep (outside the hot path), then the hot forward.
    w_p, b_p = prepare_classifier_params(weight, bias)
    out = classifier_forward(x, w_p, b_p, n_way)
    jax.block_until_ready(out)

    assert out.shape == (batch, n_way)

    # Tight check of the kernel math against a reference with the same bf16 input
    # rounding (f32 accumulation in both).
    xb = x.astype(jnp.bfloat16).astype(jnp.float32)
    wb = weight.astype(jnp.bfloat16).astype(jnp.float32)
    ref_bf16 = xb @ wb.T + bias
    assert jnp.allclose(out, ref_bf16, atol=1e-4, rtol=1e-4)

    # Loose check against the exact f32 module output (bf16 input quantization only).
    ref_f32 = x @ weight.T + bias
    assert jnp.allclose(out, ref_f32, atol=5e-2, rtol=5e-2)

    print("KERNEL_OK")
</pallas_src>

<mosaic_0001>
module attributes {stable_mosaic.version = 11 : i64} {
  func.func @_linear_kernel(%arg0: i32, %arg1: memref<8x32xbf16, #tpu.memory_space<vmem>>, %arg2: memref<32x128xbf16, #tpu.memory_space<vmem>>, %arg3: memref<1x128xf32, #tpu.memory_space<vmem>>, %arg4: memref<8x128xf32, #tpu.memory_space<vmem>>) attributes {dimension_semantics = [#tpu.dimension_semantics<parallel>], iteration_bounds = array<i64: 1>, scalar_prefetch = 0 : i64, scratch_operands = 0 : i64, tpu.core_type = #tpu.core_type<tc>, window_params = [{transform_indices = @transform_0, window_bounds = array<i64: 8, 32>}, {pipeline_mode = #tpu.pipeline_mode<synchronous>, transform_indices = @transform_1, window_bounds = array<i64: 32, 128>}, {pipeline_mode = #tpu.pipeline_mode<synchronous>, transform_indices = @transform_2, window_bounds = array<i64: 1, 128>}, {transform_indices = @transform_3, window_bounds = array<i64: 8, 128>}]} {
    %c0 = arith.constant 0 : index
    %c0_0 = arith.constant 0 : index
    %0 = vector.load %arg1[%c0, %c0_0] : memref<8x32xbf16, #tpu.memory_space<vmem>>, vector<8x32xbf16>
    %c0_1 = arith.constant 0 : index
    %c0_2 = arith.constant 0 : index
    %1 = vector.load %arg2[%c0_1, %c0_2] : memref<32x128xbf16, #tpu.memory_space<vmem>>, vector<32x128xbf16>
    %cst = arith.constant dense<0.000000e+00> : vector<8x128xf32>
    %2 = tpu.matmul %0, %1, %cst {dimension_numbers = #tpu.dot_dimension_numbers<[1], [0], [0], [1], [0, 0, 1, 1], [], []>} : vector<8x32xbf16>, vector<32x128xbf16>, vector<8x128xf32> -> vector<8x128xf32>
    %c0_3 = arith.constant 0 : index
    %c0_4 = arith.constant 0 : index
    %3 = vector.load %arg3[%c0_3, %c0_4] : memref<1x128xf32, #tpu.memory_space<vmem>>, vector<1x128xf32>
    %4 = vector.broadcast %3 : vector<1x128xf32> to vector<8x128xf32>
    %5 = arith.addf %2, %4 : vector<8x128xf32>
    %c0_5 = arith.constant 0 : index
    %c0_6 = arith.constant 0 : index
    %6 = vector.load %arg4[%c0_5, %c0_6] : memref<8x128xf32, #tpu.memory_space<vmem>>, vector<8x128xf32>
    tpu.vector_store %arg4[%c0_5, %c0_6], %5 {strides = array<i32>} : memref<8x128xf32, #tpu.memory_space<vmem>>, vector<8x128xf32>,
    return
  }
  func.func @transform_0(%arg0: i32) -> (i32, i32) {
    %c0_i32 = arith.constant 0 : i32
    %c0_i32_0 = arith.constant 0 : i32
    return %arg0, %c0_i32 : i32, i32
  }
  func.func @transform_1(%arg0: i32) -> (i32, i32) {
    %c0_i32 = arith.constant 0 : i32
    %c0_i32_0 = arith.constant 0 : i32
    %c0_i32_1 = arith.constant 0 : i32
    return %c0_i32, %c0_i32_0 : i32, i32
  }
  func.func @transform_2(%arg0: i32) -> (i32, i32) {
    %c0_i32 = arith.constant 0 : i32
    %c0_i32_0 = arith.constant 0 : i32
    %c0_i32_1 = arith.constant 0 : i32
    return %c0_i32, %c0_i32_0 : i32, i32
  }
  func.func @transform_3(%arg0: i32) -> (i32, i32) {
    %c0_i32 = arith.constant 0 : i32
    %c0_i32_0 = arith.constant 0 : i32
    return %arg0, %c0_i32 : i32, i32
  }
}

</mosaic_0001>

<bundles_post_ra>
// kernel: tpu_custom_call.1
= control target key start
LH: loop header
LB: loop body
LE: loop exit
PB: predicated region body
PF: predicated region fallthrough
CT: control target
= control target key end

     0   :  { %8 = vsyncpa [#allocation3], 0  ;;  %s256_s0 = inlined_call_operand.hbm [shape: bf16[8,32], index: 0, kind: input, shape index: {}]   ;;  %s257_s1 = inlined_call_operand.hbm [shape: bf16[32,128], index: 1, kind: input, shape index: {}]   ;;  %s258_s2 = inlined_call_operand.vmem [shape: f32[1,128], index: 2, kind: input, shape index: {}]   ;;  %s259_s3 = inlined_call_operand.hbm [shape: f32[8,128], index: 3, kind: output, shape index: {}]  }
   0x1   :  { %9 = vsyncpa [#allocation6], 0 }
   0x2   :  { %10 = vsyncpa [#allocation4], 0  ;;  %s217_s12 = smov [#allocation2]   ;;  %s218_s14 = smov [#allocation5]  }
   0x3   :  { %s17_s13 = sshll.u32 %s217_s12, 4  ;;  %s26_s15 = sshll.u32 %s218_s14, 4  ;;  %s18_s13 = int_to_ptr.vmem [resolvable:$true] %s17_s13  ;;  %s27_s15 = int_to_ptr.vmem [resolvable:$true] %s26_s15 }
   0x4   :  { %s159_s16 = scalar_lea.vmem %s18_s13, 64  ;;  %p164_p1 = scmp.lt.s32.totalorder %s18_s13, %s18_s13 }
   0x5   :  { %p160_p0 = scmp.ne.s32.totalorder %s18_s13, %s159_s16  ;;  %p165_p2 = scmp.lt.s32.totalorder %s159_s16, %s159_s16 }
   0x7   :  { %p166_p3 = por %p165_p2, %p164_p1 }
   0x9   :  { %p167_p4 = pnand %p166_p3, %p160_p0 }
   0xb   :  { %170 = shalt.err (!%p167_p4)
}
   0xc   :  { %20 = dma.hbm_to_vmem [thread:$0]  %s256_s0, 64, %s18_s13, [#allocation3]  }
   0xd   :  { %s179_s19 = scalar_lea.vmem %s27_s15, 256  ;;  %p184_p6 = scmp.lt.s32.totalorder %s27_s15, %s27_s15 }
   0xe   :  { %p180_p5 = scmp.ne.s32.totalorder %s27_s15, %s179_s19  ;;  %p185_p7 = scmp.lt.s32.totalorder %s179_s19, %s179_s19 }
  0x10   :  { %p186_p8 = por %p185_p7, %p184_p6 }
  0x12   :  { %p187_p9 = pnand %p186_p8, %p180_p5 }
  0x14   :  { %190 = shalt.err (!%p187_p9)
}
  0x15   :  { %s219_s20 = smov 64   ;;  %s220_s21 = smov 4  }
  0x16   :  { %32 = dma.hbm_to_vmem [thread:$0]  %s257_s1, 256, %s27_s15, [#allocation6], %s219_s20, %s219_s20, %s220_s21  }
  0x17   :  { %211 = dma.done.wait [#allocation3], 64  }
  0x18   :  { %212 = vsyncadd [#allocation3], 4294967232 }
  0x19   :  { %213 = dma.done.wait [#allocation6], 256  }
  0x1a   :  { %214 = vsyncadd [#allocation6], 4294967040  ;;  %v221_v0 = vmov 0.0   ;;  %vm222_vm0 = vmmov 0   ;;  %v149_v1 = vld [vmem:[#allocation5 + $0x8] sm:$0xff]   ;;  %v150_v2 = vld [vmem:[#allocation5] sm:$0xff]  }
  0x1b   :  { %134 = vmatprep.subr.bf16.mxu0 %v221_v0  ;;  %138 = vmatprep.mubr.msk.bf16.mxu0 %vm222_vm0, %v221_v0  ;;  %v42_v3 = vld [vmem:[#allocation2] sm:$0xf]  ;;  %vm66_vm1 = vcmask 261120   ;;  %s223_s1 = smov [#allocation7]  }
  0x1c   :  { %135 = vmatpush3.bf16.msra.mxu0 %v149_v1  ;;  %v127_v4 = vld [vmem:[%s258_s2] ss:$0 sm:$0xff]  ;;  %s117_s25 = sshll.u32 %s223_s1, 4  ;;  %s118_s25 = int_to_ptr.vmem [resolvable:$true] %s117_s25 }
  0x1d   :  { %136 = vmatprep.subr.bf16.mxu0 %v221_v0  ;;  %s191_s26 = scalar_lea.vmem %s118_s25, 128  ;;  %p196_p11 = scmp.lt.s32.totalorder %s118_s25, %s118_s25 }
  0x1e   :  { %p192_p10 = scmp.ne.s32.totalorder %s118_s25, %s191_s26  ;;  %p197_p12 = scmp.lt.s32.totalorder %s191_s26, %s191_s26 }
  0x20   :  { %137 = vmatpush3.bf16.msra.mxu0 %v150_v2  ;;  %p198_p13 = por %p197_p12, %p196_p11 }
  0x22   :  { %p199_p0 = pnand %p198_p13, %p192_p10 }
  0x23   :  { %139 = vmatmul.mubr.msk.bf16.vlgmr.msra.gmra.mxu0 %vm66_vm1, %v42_v3 }
  0xe3   :  { %v104_v5 = vpop.f32.mrf.mxu0 }
  0xe4   :  { %v105_v6 = vadd.f32 %v127_v4, %v104_v5 }
  0xe5   :  { %v140_v7 = vpop.f32.mrf.mxu0 }
  0xe6   :  { %110 = vst [vmem:[#allocation7] sm:$0xff] %v105_v6 }
  0xe7   :  { %v107_v8 = vpop.f32.mrf.mxu0 }
  0xe8   :  { %202 = shalt.err (!%p199_p0)
}
  0xe9   :  { %120 = dma.vmem_to_hbm [thread:$0]  %s118_s25, 128, %s259_s3, [#allocation4]   ;;  %v141_v9 = vpop.f32.mrf.mxu0 }
  0xea   :  { %215 = dma.done.wait [#allocation4], 128  }
  0xeb   :  { %216 = vsyncadd [#allocation4], 4294967168 }
  0xec   :  { %124 = vsyncpa [#allocation3], 1 }
  0xed   :  { %125 = vsyncpa [#allocation6], 1 }
  0xee   :  { %126 = vsyncpa [#allocation4], 1 }

</bundles_post_ra>
